<compile_context>
chip_gen: v6e
topology: v6e:2x2x1
jax: 0.10.0
libtpu: 0.0.40
codegen_flags: <defaults>
</compile_context>

<pallas_src>
import functools

import jax
import jax.numpy as jnp
import numpy as np
from jax.experimental import pallas as pl
from jax.experimental.pallas import tpu as pltpu


def _round_up(x, m):
    return ((x + m - 1) // m) * m


# ----------------------------------------------------------------------------
# Pallas kernel: one (batch, atom-tile, pair-tile) grid cell
# ----------------------------------------------------------------------------
def _meam_density_kernel(tab_ref, cij_ref, rvec_ref, iidx_ref, spec_ref,
                         out_ref, acc_ref, sum_ref,
                         *, rcut, nwave, ntype, n_tile):
    n_step = pl.program_id(1)
    p_step = pl.program_id(2)
    last_n = pl.num_programs(1) - 1
    last_p = pl.num_programs(2) - 1

    @pl.when(p_step == 0)
    def _():
        acc_ref[...] = jnp.zeros_like(acc_ref)

    @pl.when((n_step == 0) & (p_step == 0))
    def _():
        sum_ref[...] = jnp.zeros_like(sum_ref)

    rvec = rvec_ref[...]                       # (3, TP)   pairs on the lane dim
    iidx = iidx_ref[...]                       # (1, TP)   center atom index per pair
    spec = spec_ref[...]                       # (1, TP)   neighbor type (-1 = invalid/pad)
    tab = tab_ref[...]                         # (2W+1, NTYPE)  rows: rs | inta | params

    tp = rvec.shape[-1]

    # --- expand per-element tables to per-pair values via a one-hot matmul -----
    onehot = (jax.lax.broadcasted_iota(jnp.int32, (ntype, tp), 0)
              == spec).astype(jnp.float32)     # (NTYPE, TP); all-zero column if spec == -1
    par = jnp.dot(tab, onehot, preferred_element_type=jnp.float32)   # (2W+1, TP)
    rs_p = par[0:nwave, :]                     # (W, TP)
    inta_p = par[nwave:2 * nwave, :]           # (W, TP)
    cj = par[2 * nwave:2 * nwave + 1, :]       # (1, TP)  == 0 for invalid/padded pairs

    # --- geometry: r, cutoff, unit vector (one guarded rsqrt, no sqrt/divide) ---
    rx = rvec[0:1, :]
    ry = rvec[1:2, :]
    rz = rvec[2:3, :]
    r2 = rx * rx + ry * ry + rz * rz           # (1, TP)
    inv_r = jax.lax.rsqrt(jnp.where(r2 > 1e-16, r2, 1.0))
    r = r2 * inv_r                             # == sqrt(r2) for real pairs, ~0 when guarded

    cut = jnp.where(r < rcut, 0.5 * (jnp.cos((jnp.pi / rcut) * r) + 1.0), 0.0)
    w = cj * cut                               # (1, TP)  (mask already folded into cj)

    d = r - rs_p
    f = w * jnp.exp(-inta_p * d * d)           # (W, TP)

    feats = jnp.concatenate(
        [f, (rx * inv_r) * f, (ry * inv_r) * f, (rz * inv_r) * f], axis=0)  # (4W, TP)

    # --- on-chip scatter-to-center matrix for this (atom-tile, pair-tile) ------
    n_off = n_step * n_tile
    scat = (jax.lax.broadcasted_iota(jnp.int32, (n_tile, tp), 0) + n_off
            == iidx).astype(jnp.float32)       # (TN, TP)

    # single fused NT matmul (contract over pairs) -> lane-dense (4W, TN) accumulator
    acc_ref[...] += jax.lax.dot_general(
        feats, scat, (((1,), (1,)), ((), ())),
        preferred_element_type=jnp.float32)

    # --- finalize this atom tile: density -> sqrt -> cij weight -> atom sum ----
    @pl.when(p_step == last_p)
    def _():
        acc = acc_ref[...]
        rad = acc[0:nwave, :]
        ax = acc[nwave:2 * nwave, :]
        ay = acc[2 * nwave:3 * nwave, :]
        az = acc[3 * nwave:4 * nwave, :]
        ang = ax * ax + ay * ay + az * az
        dens = jnp.concatenate([rad, ang], axis=0) + 1e-10        # (2W, TN)
        weighted = jnp.sqrt(dens) * cij_ref[...]                  # * (1, TN), padded atoms -> 0
        sum_ref[...] += jnp.sum(weighted, axis=-1, keepdims=True)  # (2W, 1)

    # --- final MeaMDensity output: (sum_n cij[n]*sqrt(density[n,k]))^2 ---------
    @pl.when((n_step == last_n) & (p_step == last_p))
    def _():
        t = sum_ref[...]
        out_ref[...] = t * t                   # (2W, 1)


# ----------------------------------------------------------------------------
# MeaMDensity.forward (wrapper: cheap gathers + padding + kernel call)
# ----------------------------------------------------------------------------
def meam_density_forward(coordinates, numatoms, atom_index, shifts, species,
                         rs, inta, params, cij, rcut,
                         *, pair_tile=1024, atom_tile=256):
    """coordinates (B,N,3) f32, numatoms (B,) i32, atom_index (2,B,P) i32,
    shifts (B,P,3) f32, species (B,N) i32, cij (N,) f32.  Returns (B, 2W) f32."""
    B, N, _ = coordinates.shape
    P = atom_index.shape[-1]
    NTYPE, W = rs.shape

    i_idx = atom_index[0]                                       # (B, P)
    j_idx = atom_index[1]                                       # (B, P)

    coords_i = jnp.take_along_axis(coordinates, i_idx[..., None], axis=1)
    coords_j = jnp.take_along_axis(coordinates, j_idx[..., None], axis=1)
    # pairs on the lane dim: (B, 3, P)
    rvec = jnp.transpose((coords_j + shifts - coords_i).astype(jnp.float32), (0, 2, 1))

    spec_j = jnp.take_along_axis(species, j_idx, axis=1)        # (B, P)
    valid = ((i_idx < numatoms[:, None]) & (j_idx < numatoms[:, None]) &
             (i_idx != j_idx))
    spec_m = jnp.where(valid, spec_j, -1).astype(jnp.int32)     # -1 => zero contribution
    i_idx = i_idx.astype(jnp.int32)

    # tiny per-element parameter table, expanded per pair inside the kernel
    tab = jnp.concatenate([rs.T, inta.T, params[None, :]],
                          axis=0).astype(jnp.float32)           # (2W+1, NTYPE)

    # tiling: pairs padded to a lane-friendly multiple of 128; atoms tiled for VMEM
    tp = min(pair_tile, _round_up(P, 128))
    P_pad = _round_up(P, tp)
    tn = min(atom_tile, _round_up(N, 8))
    N_pad = _round_up(N, tn)

    if P_pad != P:
        pad = P_pad - P
        rvec = jnp.pad(rvec, ((0, 0), (0, 0), (0, pad)))
        spec_m = jnp.pad(spec_m, ((0, 0), (0, pad)), constant_values=-1)
        i_idx = jnp.pad(i_idx, ((0, 0), (0, pad)))

    cij_p = cij.astype(jnp.float32)
    if N_pad != N:
        cij_p = jnp.pad(cij_p, (0, N_pad - N))                  # padded atoms -> zero weight
    cij_in = cij_p[None, :]                                     # (1, N_pad)

    iidx_in = i_idx[:, None, :]                                 # (B, 1, P_pad)
    spec_in = spec_m[:, None, :]                                # (B, 1, P_pad)

    kernel = functools.partial(_meam_density_kernel, rcut=float(rcut),
                               nwave=W, ntype=NTYPE, n_tile=tn)

    out3 = pl.pallas_call(
        kernel,
        out_shape=jax.ShapeDtypeStruct((B, 2 * W, 1), jnp.float32),
        grid=(B, N_pad // tn, P_pad // tp),
        in_specs=[
            pl.BlockSpec((2 * W + 1, NTYPE), lambda b, n, p: (0, 0)),   # param table
            pl.BlockSpec((1, tn), lambda b, n, p: (0, n)),              # cij (per-atom weight)
            pl.BlockSpec((None, 3, tp), lambda b, n, p: (b, 0, p)),     # rvec
            pl.BlockSpec((None, 1, tp), lambda b, n, p: (b, 0, p)),     # i_idx
            pl.BlockSpec((None, 1, tp), lambda b, n, p: (b, 0, p)),     # spec_j (masked)
        ],
        out_specs=pl.BlockSpec((None, 2 * W, 1), lambda b, n, p: (b, 0, 0)),
        scratch_shapes=[pltpu.VMEM((4 * W, tn), jnp.float32),   # density accumulator
                        pltpu.VMEM((2 * W, 1), jnp.float32)],   # atom-sum accumulator
        compiler_params=pltpu.CompilerParams(
            dimension_semantics=("parallel", "arbitrary", "arbitrary"),
            vmem_limit_bytes=32 * 1024 * 1024),
    )(tab, cij_in, rvec, iidx_in, spec_in)

    return out3[:, :, 0]                                        # (B, 2W)


# ----------------------------------------------------------------------------
# Pure-JAX reference (for validation)
# ----------------------------------------------------------------------------
def reference_forward(coordinates, numatoms, atom_index, shifts, species,
                      rs, inta, params, cij, rcut):
    B, N, _ = coordinates.shape
    i_idx, j_idx = atom_index[0], atom_index[1]
    ci = jnp.take_along_axis(coordinates, i_idx[..., None], axis=1)
    cjc = jnp.take_along_axis(coordinates, j_idx[..., None], axis=1)
    rvec = cjc + shifts - ci
    r = jnp.sqrt(jnp.sum(rvec * rvec, axis=-1))                 # (B, P)
    spec_j = jnp.take_along_axis(species, j_idx, axis=1)
    cjw = params[spec_j]
    rs_p = rs[spec_j]
    inta_p = inta[spec_j]
    valid = ((i_idx < numatoms[:, None]) & (j_idx < numatoms[:, None]) &
             (i_idx != j_idx)).astype(jnp.float32)
    cut = jnp.where(r < rcut, 0.5 * (jnp.cos(jnp.pi * r / rcut) + 1.0), 0.0)
    w = cjw * cut * valid
    gauss = jnp.exp(-inta_p * (r[..., None] - rs_p) ** 2)
    f = w[..., None] * gauss                                    # (B, P, W)
    scat = (i_idx[:, None, :] == jnp.arange(N)[None, :, None]).astype(jnp.float32)
    rad = jnp.einsum('bnp,bpw->bnw', scat, f)
    rsafe = jnp.where(r > 1e-8, r, 1.0)
    rhat = rvec / rsafe[..., None]
    A = jnp.einsum('bnp,bpa,bpw->bnaw', scat, rhat, f)
    ang = jnp.sum(A * A, axis=2)
    # MeaMDensity head
    density = jnp.concatenate((rad, ang), axis=-1) + 1e-10      # (B, N, 2W)
    ele = jnp.sqrt(density) * cij[None, :, None]                # 'ijk,j->ijk'
    s = jnp.sum(ele, axis=1)                                    # sum over atoms
    return s * s                                                # (B, 2W)


# ----------------------------------------------------------------------------
if __name__ == "__main__":
    B, N, P, W, NTYPE = 2, 8, 16, 8, 3
    RCUT = 4.0

    key = jax.random.PRNGKey(0)
    k1, k2, k3, k4, k5 = jax.random.split(key, 5)

    coordinates = (jax.random.uniform(k1, (B, N, 3), jnp.float32) * 3.0)
    numatoms = jnp.array([N, N - 2], dtype=jnp.int32)
    atom_index = jax.random.randint(k2, (2, B, P), 0, N, dtype=jnp.int32)
    shifts = 0.1 * jax.random.normal(k3, (B, P, 3), jnp.float32)
    species = jax.random.randint(k4, (B, N), 0, NTYPE, dtype=jnp.int32)

    # deterministic descriptor hyper-parameters (shapes per module docstring)
    rs = jnp.stack([jnp.linspace(0.5, RCUT - 0.5, W) + 0.1 * t
                    for t in range(NTYPE)]).astype(jnp.float32)          # (NTYPE, W)
    inta = (0.5 + 0.1 * jnp.arange(NTYPE, dtype=jnp.float32))[:, None] * \
           jnp.ones((NTYPE, W), jnp.float32)                             # (NTYPE, W)
    params = jnp.array([1.0, 0.9, 1.1], dtype=jnp.float32)               # (NTYPE,)
    cij = 0.5 + jax.random.uniform(k5, (N,), jnp.float32)                # (N,)  MeaMDensity.cij

    out = meam_density_forward(coordinates, numatoms, atom_index, shifts,
                               species, rs, inta, params, cij, RCUT)
    out = jax.block_until_ready(out)

    ref = reference_forward(coordinates, numatoms, atom_index, shifts,
                            species, rs, inta, params, cij, RCUT)
    ref = jax.block_until_ready(ref)

    assert out.shape == (B, 2 * W), out.shape
    np.testing.assert_allclose(np.asarray(out), np.asarray(ref),
                               rtol=1e-3, atol=1e-3)
    print("KERNEL_OK")
</pallas_src>

<mosaic_0001>
module attributes {stable_mosaic.version = 11 : i64} {
  func.func @_meam_density_kernel(%arg0: i32, %arg1: i32, %arg2: i32, %arg3: memref<17x3xf32, #tpu.memory_space<vmem>>, %arg4: memref<1x8xf32, #tpu.memory_space<vmem>>, %arg5: memref<1x3x128xf32, #tpu.memory_space<vmem>>, %arg6: memref<1x1x128xi32, #tpu.memory_space<vmem>>, %arg7: memref<1x1x128xi32, #tpu.memory_space<vmem>>, %arg8: memref<1x16x1xf32, #tpu.memory_space<vmem>>, %arg9: memref<32x8xf32, #tpu.memory_space<vmem>>, %arg10: memref<16x1xf32, #tpu.memory_space<vmem>>) attributes {dimension_semantics = [#tpu.dimension_semantics<parallel>, #tpu.dimension_semantics<arbitrary>, #tpu.dimension_semantics<arbitrary>], iteration_bounds = array<i64: 2, 1, 1>, scalar_prefetch = 0 : i64, scratch_operands = 2 : i64, tpu.core_type = #tpu.core_type<tc>, window_params = [{pipeline_mode = #tpu.pipeline_mode<synchronous>, transform_indices = @transform_0, window_bounds = array<i64: 17, 3>}, {transform_indices = @transform_1, window_bounds = array<i64: 1, 8>}, {transform_indices = @transform_2, window_bounds = array<i64: 1, 3, 128>}, {transform_indices = @transform_3, window_bounds = array<i64: 1, 1, 128>}, {transform_indices = @transform_4, window_bounds = array<i64: 1, 1, 128>}, {transform_indices = @transform_5, window_bounds = array<i64: 1, 16, 1>}]} {
    %c0_i32 = arith.constant 0 : i32
    %0 = arith.cmpi eq, %arg2, %c0_i32 : i32
    %1 = arith.extui %0 : i1 to i32
    %c0_i32_0 = arith.constant 0 : i32
    %2 = arith.cmpi ne, %1, %c0_i32_0 : i32
    scf.if %2 {
      %cst_32 = arith.constant 0.000000e+00 : f32
      %89 = vector.broadcast %cst_32 : f32 to vector<32x8xf32>
      %c0_33 = arith.constant 0 : index
      %c0_34 = arith.constant 0 : index
      %90 = vector.load %arg9[%c0_33, %c0_34] : memref<32x8xf32, #tpu.memory_space<vmem>>, vector<32x8xf32>
      tpu.vector_store %arg9[%c0_33, %c0_34], %89 {strides = array<i32>} : memref<32x8xf32, #tpu.memory_space<vmem>>, vector<32x8xf32>,
    } else {
    }
    %c0_i32_1 = arith.constant 0 : i32
    %3 = arith.cmpi eq, %arg1, %c0_i32_1 : i32
    %c0_i32_2 = arith.constant 0 : i32
    %4 = arith.cmpi eq, %arg2, %c0_i32_2 : i32
    %5 = arith.andi %3, %4 : i1
    %6 = arith.extui %5 : i1 to i32
    %c0_i32_3 = arith.constant 0 : i32
    %7 = arith.cmpi ne, %6, %c0_i32_3 : i32
    scf.if %7 {
      %cst_32 = arith.constant 0.000000e+00 : f32
      %89 = vector.broadcast %cst_32 : f32 to vector<16x1xf32>
      %c0_33 = arith.constant 0 : index
      %c0_34 = arith.constant 0 : index
      %90 = vector.load %arg10[%c0_33, %c0_34] : memref<16x1xf32, #tpu.memory_space<vmem>>, vector<16x1xf32>
      tpu.vector_store %arg10[%c0_33, %c0_34], %89 {strides = array<i32>} : memref<16x1xf32, #tpu.memory_space<vmem>>, vector<16x1xf32>,
    } else {
    }
    %c0 = arith.constant 0 : index
    %c0_4 = arith.constant 0 : index
    %c0_5 = arith.constant 0 : index
    %8 = vector.load %arg5[%c0, %c0_4, %c0_5] : memref<1x3x128xf32, #tpu.memory_space<vmem>>, vector<1x3x128xf32>
    %9 = vector.shape_cast %8 : vector<1x3x128xf32> to vector<3x128xf32>
    %c0_6 = arith.constant 0 : index
    %c0_7 = arith.constant 0 : index
    %c0_8 = arith.constant 0 : index
    %10 = vector.load %arg6[%c0_6, %c0_7, %c0_8] : memref<1x1x128xi32, #tpu.memory_space<vmem>>, vector<1x1x128xi32>
    %11 = vector.shape_cast %10 : vector<1x1x128xi32> to vector<1x128xi32>
    %c0_9 = arith.constant 0 : index
    %c0_10 = arith.constant 0 : index
    %c0_11 = arith.constant 0 : index
    %12 = vector.load %arg7[%c0_9, %c0_10, %c0_11] : memref<1x1x128xi32, #tpu.memory_space<vmem>>, vector<1x1x128xi32>
    %13 = vector.shape_cast %12 : vector<1x1x128xi32> to vector<1x128xi32>
    %c0_12 = arith.constant 0 : index
    %c0_13 = arith.constant 0 : index
    %14 = vector.load %arg3[%c0_12, %c0_13] : memref<17x3xf32, #tpu.memory_space<vmem>>, vector<17x3xf32>
    %15 = tpu.iota {dimensions = array<i32: 0>} : vector<3x128xi32>
    %16 = vector.broadcast %13 : vector<1x128xi32> to vector<3x128xi32>
    %17 = arith.cmpi eq, %15, %16 : vector<3x128xi32>
    %18 = arith.extui %17 : vector<3x128xi1> to vector<3x128xi32>
    %19 = arith.sitofp %18 : vector<3x128xi32> to vector<3x128xf32>
    %cst = arith.constant dense<0.000000e+00> : vector<17x128xf32>
    %20 = tpu.matmul %14, %19, %cst {dimension_numbers = #tpu.dot_dimension_numbers<[1], [0], [0], [1], [0, 0, 1, 1], [], []>} : vector<17x3xf32>, vector<3x128xf32>, vector<17x128xf32> -> vector<17x128xf32>
    %21 = vector.extract_strided_slice %20 {offsets = [0, 0], sizes = [8, 128], strides = [1, 1]} : vector<17x128xf32> to vector<8x128xf32>
    %22 = vector.extract_strided_slice %20 {offsets = [8, 0], sizes = [8, 128], strides = [1, 1]} : vector<17x128xf32> to vector<8x128xf32>
    %23 = vector.extract_strided_slice %20 {offsets = [16, 0], sizes = [1, 128], strides = [1, 1]} : vector<17x128xf32> to vector<1x128xf32>
    %24 = vector.extract_strided_slice %9 {offsets = [0, 0], sizes = [1, 128], strides = [1, 1]} : vector<3x128xf32> to vector<1x128xf32>
    %25 = vector.extract_strided_slice %9 {offsets = [1, 0], sizes = [1, 128], strides = [1, 1]} : vector<3x128xf32> to vector<1x128xf32>
    %26 = vector.extract_strided_slice %9 {offsets = [2, 0], sizes = [1, 128], strides = [1, 1]} : vector<3x128xf32> to vector<1x128xf32>
    %27 = arith.mulf %24, %24 : vector<1x128xf32>
    %28 = arith.mulf %25, %25 : vector<1x128xf32>
    %29 = arith.addf %27, %28 : vector<1x128xf32>
    %30 = arith.mulf %26, %26 : vector<1x128xf32>
    %31 = arith.addf %29, %30 : vector<1x128xf32>
    %cst_14 = arith.constant 1.000000e-16 : f32
    %32 = vector.broadcast %cst_14 : f32 to vector<1x128xf32>
    %33 = arith.cmpf ogt, %31, %32 : vector<1x128xf32>
    %cst_15 = arith.constant 1.000000e+00 : f32
    %34 = vector.broadcast %cst_15 : f32 to vector<1x128xf32>
    %35 = arith.select %33, %31, %34 : vector<1x128xi1>, vector<1x128xf32>
    %36 = math.rsqrt %35 : vector<1x128xf32>
    %37 = arith.mulf %31, %36 : vector<1x128xf32>
    %cst_16 = arith.constant 4.000000e+00 : f32
    %38 = vector.broadcast %cst_16 : f32 to vector<1x128xf32>
    %39 = arith.cmpf olt, %37, %38 : vector<1x128xf32>
    %cst_17 = arith.constant 0.785398185 : f32
    %40 = vector.broadcast %cst_17 : f32 to vector<1x128xf32>
    %41 = arith.mulf %40, %37 : vector<1x128xf32>
    %42 = math.cos %41 : vector<1x128xf32>
    %cst_18 = arith.constant 1.000000e+00 : f32
    %43 = vector.broadcast %cst_18 : f32 to vector<1x128xf32>
    %44 = arith.addf %42, %43 : vector<1x128xf32>
    %cst_19 = arith.constant 5.000000e-01 : f32
    %45 = vector.broadcast %cst_19 : f32 to vector<1x128xf32>
    %46 = arith.mulf %45, %44 : vector<1x128xf32>
    %cst_20 = arith.constant 0.000000e+00 : f32
    %47 = vector.broadcast %cst_20 : f32 to vector<1x128xf32>
    %48 = arith.select %39, %46, %47 : vector<1x128xi1>, vector<1x128xf32>
    %49 = arith.mulf %23, %48 : vector<1x128xf32>
    %50 = vector.broadcast %37 : vector<1x128xf32> to vector<8x128xf32>
    %51 = arith.subf %50, %21 : vector<8x128xf32>
    %cst_21 = arith.constant 0.000000e+00 : f32
    %52 = vector.broadcast %cst_21 : f32 to vector<8x128xf32>
    %53 = arith.subf %52, %22 : vector<8x128xf32>
    %54 = arith.mulf %53, %51 : vector<8x128xf32>
    %55 = arith.mulf %54, %51 : vector<8x128xf32>
    %56 = math.exp %55 : vector<8x128xf32>
    %57 = vector.broadcast %49 : vector<1x128xf32> to vector<8x128xf32>
    %58 = arith.mulf %57, %56 : vector<8x128xf32>
    %59 = arith.mulf %24, %36 : vector<1x128xf32>
    %60 = vector.broadcast %59 : vector<1x128xf32> to vector<8x128xf32>
    %61 = arith.mulf %60, %58 : vector<8x128xf32>
    %62 = arith.mulf %25, %36 : vector<1x128xf32>
    %63 = vector.broadcast %62 : vector<1x128xf32> to vector<8x128xf32>
    %64 = arith.mulf %63, %58 : vector<8x128xf32>
    %65 = arith.mulf %26, %36 : vector<1x128xf32>
    %66 = vector.broadcast %65 : vector<1x128xf32> to vector<8x128xf32>
    %67 = arith.mulf %66, %58 : vector<8x128xf32>
    %68 = tpu.concatenate %58, %61, %64, %67 in 0 : vector<8x128xf32>, vector<8x128xf32>, vector<8x128xf32>, vector<8x128xf32> -> vector<32x128xf32>
    %c8_i32 = arith.constant 8 : i32
    %69 = arith.muli %arg1, %c8_i32 : i32
    %70 = tpu.iota {dimensions = array<i32: 0>} : vector<8x128xi32>
    %71 = vector.broadcast %69 : i32 to vector<8x128xi32>
    %72 = arith.addi %70, %71 : vector<8x128xi32>
    %73 = vector.broadcast %11 : vector<1x128xi32> to vector<8x128xi32>
    %74 = arith.cmpi eq, %72, %73 : vector<8x128xi32>
    %75 = arith.extui %74 : vector<8x128xi1> to vector<8x128xi32>
    %76 = arith.sitofp %75 : vector<8x128xi32> to vector<8x128xf32>
    %c0_22 = arith.constant 0 : index
    %c0_23 = arith.constant 0 : index
    %77 = vector.load %arg9[%c0_22, %c0_23] : memref<32x8xf32, #tpu.memory_space<vmem>>, vector<32x8xf32>
    %cst_24 = arith.constant dense<0.000000e+00> : vector<32x8xf32>
    %78 = tpu.matmul %68, %76, %cst_24 {dimension_numbers = #tpu.dot_dimension_numbers<[1], [1], [0], [0], [0, 0, 1, 0], [], []>} : vector<32x128xf32>, vector<8x128xf32>, vector<32x8xf32> -> vector<32x8xf32>
    %79 = arith.addf %77, %78 : vector<32x8xf32>
    %c0_25 = arith.constant 0 : index
    %c0_26 = arith.constant 0 : index
    %80 = vector.load %arg9[%c0_25, %c0_26] : memref<32x8xf32, #tpu.memory_space<vmem>>, vector<32x8xf32>
    tpu.vector_store %arg9[%c0_25, %c0_26], %79 {strides = array<i32>} : memref<32x8xf32, #tpu.memory_space<vmem>>, vector<32x8xf32>,
    %c0_i32_27 = arith.constant 0 : i32
    %81 = arith.cmpi eq, %arg2, %c0_i32_27 : i32
    %82 = arith.extui %81 : i1 to i32
    %c0_i32_28 = arith.constant 0 : i32
    %83 = arith.cmpi ne, %82, %c0_i32_28 : i32
    scf.if %83 {
      %c0_32 = arith.constant 0 : index
      %c0_33 = arith.constant 0 : index
      %89 = vector.load %arg9[%c0_32, %c0_33] : memref<32x8xf32, #tpu.memory_space<vmem>>, vector<32x8xf32>
      %90 = vector.extract_strided_slice %89 {offsets = [0, 0], sizes = [8, 8], strides = [1, 1]} : vector<32x8xf32> to vector<8x8xf32>
      %91 = vector.extract_strided_slice %89 {offsets = [8, 0], sizes = [8, 8], strides = [1, 1]} : vector<32x8xf32> to vector<8x8xf32>
      %92 = vector.extract_strided_slice %89 {offsets = [16, 0], sizes = [8, 8], strides = [1, 1]} : vector<32x8xf32> to vector<8x8xf32>
      %93 = vector.extract_strided_slice %89 {offsets = [24, 0], sizes = [8, 8], strides = [1, 1]} : vector<32x8xf32> to vector<8x8xf32>
      %94 = arith.mulf %91, %91 : vector<8x8xf32>
      %95 = arith.mulf %92, %92 : vector<8x8xf32>
      %96 = arith.addf %94, %95 : vector<8x8xf32>
      %97 = arith.mulf %93, %93 : vector<8x8xf32>
      %98 = arith.addf %96, %97 : vector<8x8xf32>
      %99 = tpu.concatenate %90, %98 in 0 : vector<8x8xf32>, vector<8x8xf32> -> vector<16x8xf32>
      %cst_34 = arith.constant 1.000000e-10 : f32
      %100 = vector.broadcast %cst_34 : f32 to vector<16x8xf32>
      %101 = arith.addf %99, %100 : vector<16x8xf32>
      %102 = math.sqrt %101 : vector<16x8xf32>
      %c0_35 = arith.constant 0 : index
      %c0_36 = arith.constant 0 : index
      %103 = vector.load %arg4[%c0_35, %c0_36] : memref<1x8xf32, #tpu.memory_space<vmem>>, vector<1x8xf32>
      %104 = vector.broadcast %103 : vector<1x8xf32> to vector<16x8xf32>
      %105 = arith.mulf %102, %104 : vector<16x8xf32>
      %c0_37 = arith.constant 0 : index
      %c0_38 = arith.constant 0 : index
      %106 = vector.load %arg10[%c0_37, %c0_38] : memref<16x1xf32, #tpu.memory_space<vmem>>, vector<16x1xf32>
      %cst_39 = arith.constant dense<0.000000e+00> : vector<16xf32>
      %107 = vector.multi_reduction <add>, %105, %cst_39 [1] : vector<16x8xf32> to vector<16xf32>
      %108 = vector.shape_cast %107 : vector<16xf32> to vector<16x1xf32>
      %109 = arith.addf %106, %108 : vector<16x1xf32>
      %c0_40 = arith.constant 0 : index
      %c0_41 = arith.constant 0 : index
      %110 = vector.load %arg10[%c0_40, %c0_41] : memref<16x1xf32, #tpu.memory_space<vmem>>, vector<16x1xf32>
      tpu.vector_store %arg10[%c0_40, %c0_41], %109 {strides = array<i32>} : memref<16x1xf32, #tpu.memory_space<vmem>>, vector<16x1xf32>,
    } else {
    }
    %c0_i32_29 = arith.constant 0 : i32
    %84 = arith.cmpi eq, %arg1, %c0_i32_29 : i32
    %c0_i32_30 = arith.constant 0 : i32
    %85 = arith.cmpi eq, %arg2, %c0_i32_30 : i32
    %86 = arith.andi %84, %85 : i1
    %87 = arith.extui %86 : i1 to i32
    %c0_i32_31 = arith.constant 0 : i32
    %88 = arith.cmpi ne, %87, %c0_i32_31 : i32
    scf.if %88 {
      %c0_32 = arith.constant 0 : index
      %c0_33 = arith.constant 0 : index
      %89 = vector.load %arg10[%c0_32, %c0_33] : memref<16x1xf32, #tpu.memory_space<vmem>>, vector<16x1xf32>
      %90 = arith.mulf %89, %89 : vector<16x1xf32>
      %c0_34 = arith.constant 0 : index
      %c0_35 = arith.constant 0 : index
      %c0_36 = arith.constant 0 : index
      %91 = vector.load %arg8[%c0_34, %c0_35, %c0_36] : memref<1x16x1xf32, #tpu.memory_space<vmem>>, vector<1x16x1xf32>
      %92 = vector.shape_cast %91 : vector<1x16x1xf32> to vector<16x1xf32>
      %93 = vector.shape_cast %90 : vector<16x1xf32> to vector<1x16x1xf32>
      tpu.vector_store %arg8[%c0_34, %c0_35, %c0_36], %93 {strides = array<i32>} : memref<1x16x1xf32, #tpu.memory_space<vmem>>, vector<1x16x1xf32>,
    } else {
    }
    return
  }
  func.func @transform_0(%arg0: i32, %arg1: i32, %arg2: i32) -> (i32, i32) {
    %c0_i32 = arith.constant 0 : i32
    %c0_i32_0 = arith.constant 0 : i32
    %c0_i32_1 = arith.constant 0 : i32
    return %c0_i32, %c0_i32_0 : i32, i32
  }
  func.func @transform_1(%arg0: i32, %arg1: i32, %arg2: i32) -> (i32, i32) {
    %c0_i32 = arith.constant 0 : i32
    %c0_i32_0 = arith.constant 0 : i32
    return %c0_i32, %arg1 : i32, i32
  }
  func.func @transform_2(%arg0: i32, %arg1: i32, %arg2: i32) -> (i32, i32, i32) {
    %c0_i32 = arith.constant 0 : i32
    %c0_i32_0 = arith.constant 0 : i32
    return %arg0, %c0_i32, %arg2 : i32, i32, i32
  }
  func.func @transform_3(%arg0: i32, %arg1: i32, %arg2: i32) -> (i32, i32, i32) {
    %c0_i32 = arith.constant 0 : i32
    %c0_i32_0 = arith.constant 0 : i32
    return %arg0, %c0_i32, %arg2 : i32, i32, i32
  }
  func.func @transform_4(%arg0: i32, %arg1: i32, %arg2: i32) -> (i32, i32, i32) {
    %c0_i32 = arith.constant 0 : i32
    %c0_i32_0 = arith.constant 0 : i32
    return %arg0, %c0_i32, %arg2 : i32, i32, i32
  }
  func.func @transform_5(%arg0: i32, %arg1: i32, %arg2: i32) -> (i32, i32, i32) {
    %c0_i32 = arith.constant 0 : i32
    %c0_i32_0 = arith.constant 0 : i32
    %c0_i32_1 = arith.constant 0 : i32
    return %arg0, %c0_i32, %c0_i32_0 : i32, i32, i32
  }
}

</mosaic_0001>

<bundles_post_ra>
// kernel: tpu_custom_call.1
= control target key start
LH: loop header
LB: loop body
LE: loop exit
PB: predicated region body
PF: predicated region fallthrough
CT: control target
= control target key end

     0   :  { %s1040_s18 = smov 0   ;;  %s1042_s19 = smov 0   ;;  %s1184_s0 = inlined_call_operand.vmem [shape: f32[17,3], index: 0, kind: input, shape index: {}]   ;;  %s1185_s1 = inlined_call_operand.vmem [shape: f32[1,8], index: 1, kind: input, shape index: {}]   ;;  %s1186_s2 = inlined_call_operand.vmem [shape: f32[2,3,128], index: 2, kind: input, shape index: {}]   ;;  %s1187_s3 = inlined_call_operand.vmem [shape: s32[2,1,128], index: 3, kind: input, shape index: {}]   ;;  %s1188_s4 = inlined_call_operand.vmem [shape: s32[2,1,128], index: 4, kind: input, shape index: {}]   ;;  %s1189_s5 = inlined_call_operand.vmem [shape: f32[2,16,1], index: 5, kind: output, shape index: {}]  }
   0x1   :  { %s1044_s20 = smov 0  }
   0x2 LB: > { %s34_s21 = sadd.s32 1, %s995_s19  ;;  %p879_p0 = scmp.ge.s32.totalorder %s999_s20, 1  ;;  %s999_s20 = sphi %s1044_s20, %s15_s20   ;;  %s995_s19 = sphi %s1042_s19, %s1193_s19   ;;  %s991_s18 = sphi %s1040_s18, %s1192_s18  }
   0x3   : > { %p36_p1 = scmp.ge.s32.totalorder %s34_s21, 2  ;;  %p244_p2 = scmp.lt.s32.totalorder %s999_s20, 3 }
   0x5   : > { %s1195_s21 = smov (%p36_p1, %s34_s21), 0  ;;  %p245_p3 = pnand %p879_p0, %p244_p2 }
   0x6   : > { %p292_p4 = scmp.lt.s32.totalorder (!%p245_p3), %s991_s18, 1 }
   0x7   : > { %248 = sbr.rel (%p245_p3) target bundleno = 631 (0x277), region = 40 }
   0xc   : > { %v339_v0 = vlaneseq  ;;  %v1001_v1 = vmov 0.0   ;;  %vm1002_vm0 = vmmov 0   ;;  %s1197_s18 = smov (!%p292_p4, %s991_s18), 1  ;;  %vm358_vm1 = vcmask 1042432   ;;  %v336_v5 = vld [vmem:[%s1184_s0] sm:$0xff]  ;;  %v337_v10 = vld [vmem:[%s1184_s0 + $0x8] sm:$0xff] }
   0xd   : > { %909 = vmatprep.subr.mxu0 %v1001_v1  ;;  %911 = vmatprep.mubr.msk.f32.mxu0 %vm1002_vm0, %v1001_v1  ;;  %s880_s22 = sshll.u32 %s1197_s18, 2  ;;  %s310_s25 = scalar_lea.vmem %s1188_s4, %s1197_s18  ;;  %vm348_vm3 = vcmask 23552   ;;  %v338_v13 = vld [vmem:[%s1184_s0 + $0x10] sm:$0x1]  ;;  %v1003_v29 = vmov 683565275  }
   0xe   : > { %v1063_v2 = vshrl.u32 %v339_v0, 7  ;;  %s298_s28 = scalar_lea.vmem %s1186_s2, %s880_s22  ;;  %v883_v3 = vld [vmem:[%s310_s25] ss:$0 sm:$0xff]  ;;  %v1004_v31 = vmov 2475754826   ;;  %s304_s12 = scalar_lea.vmem %s1187_s3, %s1197_s18  ;;  %vm320_vm15 = vcmask 64512  }
   0xf   : > { %v1073_v4 = vld [vmem:[%s298_s28] sm:$0x7]  ;;  %v1005_v33 = vmov 2131351028   ;;  %v1006_v35 = vmov 2102212464  }
  0x10   : > { %vm345_vm2 = vcmp.eq.s32.totalorder %v1063_v2, %v883_v3  ;;  %v442_v7 = vmul.f32 %v1073_v4, %v1073_v4  ;;  %v1007_v37 = vmov 920167782   ;;  %v1008_v44 = vmov 1326507024   ;;  %322 = vst.msk [vmem:[#allocation2 + $0x8] sm:$0xff] %vm320_vm15, %v1001_v1  ;;  %321 = vst.msk [vmem:[#allocation2] sm:$0xff] %vm320_vm15, %v1001_v1 }
  0x11   : > { %v884_v6 = vsel %vm345_vm2, 1.0, %v1001_v1  ;;  %323 = vst.msk [vmem:[#allocation2 + $0x10] sm:$0xff] %vm320_vm15, %v1001_v1  ;;  %324 = vst.msk [vmem:[#allocation2 + $0x18] sm:$0xff] %vm320_vm15, %v1001_v1  ;;  %s899_s15 = sshll.u32 %s1197_s18, 4 }
  0x12   : > { %910 = vmatpush3.msk.msra.mxu0 %vm358_vm1, %v884_v6  ;;  %v444_v8 = vrot.slane %v442_v7, 1  ;;  %v447_v9 = vrot.slane %v442_v7, 2  ;;  %s315_s22 = scalar_lea.vmem %s1189_s5, %s899_s15 }
  0x13   : > { %912 = vmatmul.mubr.msk.f32.vlgmr.msra.gmra.mxu0 %vm348_vm3, %v336_v5 }
  0x14   : > { %914 = vmatprep.mubr.msk.f32.mxu0 %vm1002_vm0, %v1001_v1  ;;  %v446_v11 = vadd.f32 %v444_v8, %v442_v7 }
  0x16   : > { %v449_v12 = vadd.f32 %v447_v9, %v446_v11 }
  0x17   : > { %915 = vmatmul.mubr.msk.f32.gmra.mxu0 %vm348_vm3, %v337_v10 }
  0x18   : > { %917 = vmatprep.mubr.msk.f32.mxu0 %vm1002_vm0, %v1001_v1  ;;  %vm450_vm4 = vcmp.gt.f32.partialorder %v449_v12, 1e-16 }
  0x19   : > { %v451_v14 = vsel %vm450_vm4, %v449_v12, 1.0 }
  0x1a   : > { %965 = vrsqrt.f32 %v451_v14 }
  0x1b   : > { %918 = vmatmul.mubr.msk.f32.gmra.mxu0 %vm348_vm3, %v338_v13 }
  0x27   : > { %v1095_v15 = vpop.eup %965 }
  0x28   : > { %v1098_v16 = vmul.f32 %v1095_v15, %v449_v12 }
  0x2a   : > { %v1101_v17 = vmul.f32 0.7853982, %v1098_v16  ;;  %vm454_vm4 = vcmp.lt.f32.partialorder %v1098_v16, 4.0 }
  0x2c   : > { %v459_v18 = vand.u32 2139095040, %v1101_v17  ;;  %v456_v20 = vand.u32 2147483647, %v1101_v17  ;;  %vm458_vm12 = vcmp.lt.s32.totalorder %v1101_v17, 0  ;;  %vm548_vm3 = vweird.f32 %v1101_v17 }
  0x2e   : > { %v460_v19 = vshrl.u32 %v459_v18, 23  ;;  %v463_v23 = vand.u32 8388607, %v456_v20  ;;  %vm1120_vm13 = vcmp.le.f32.partialorder %v456_v20, 0.7853982 }
  0x30   : > { %v889_v21 = vadd.s32 4294967169, %v460_v19  ;;  %v464_v27 = vor.u32 8388608, %v463_v23 }
  0x32   : > { %v466_v22 = vadd.s32 1, %v889_v21  ;;  %v504_v46 = vshll.u32 %v464_v27, 8 }
  0x34   : > { %vm467_vm5 = vcmp.gt.s32.totalorder %v466_v22, 0 }
  0x35   : > { %v468_v24 = vsel %vm467_vm5, %v466_v22, 0  ;;  %vm330_vm5 = vcmask 7168  }
  0x36   : > { %v470_v25 = vand.u32 31, %v468_v24  ;;  %v469_v26 = vshrl.u32 %v468_v24, 5  ;;  %331 = vst.msk [vmem:[#allocation3] sm:$0xff] %vm330_vm5, %v1001_v1  ;;  %332 = vst.msk [vmem:[#allocation3 + $0x8] sm:$0xff] %vm330_vm5, %v1001_v1 }
  0x38   : > { %v471_v28 = vsub.s32 32, %v470_v25  ;;  %v473_v30 = vshll.u32 %v1003_v29, %v470_v25  ;;  %v476_v32 = vshll.u32 %v1004_v31, %v470_v25  ;;  %v479_v34 = vshll.u32 %v1005_v33, %v470_v25 }
  0x39   : > { %v482_v36 = vshll.u32 %v1006_v35, %v470_v25  ;;  %v485_v38 = vshll.u32 %v1007_v37, %v470_v25  ;;  %vm488_vm6 = vcmp.lt.s32.totalorder %v469_v26, 1  ;;  %vm491_vm7 = vcmp.lt.s32.totalorder %v469_v26, 4 }
  0x3a   : > { %v472_v39 = vshrl.u32 %v1003_v29, %v471_v28  ;;  %v474_v40 = vshrl.u32 %v1004_v31, %v471_v28  ;;  %v477_v41 = vshrl.u32 %v1005_v33, %v471_v28  ;;  %v480_v42 = vshrl.u32 %v1006_v35, %v471_v28 }
  0x3b   : > { %v483_v43 = vshrl.u32 %v1007_v37, %v471_v28  ;;  %v486_v45 = vshrl.u32 %v1008_v44, %v471_v28  ;;  %vm489_vm8 = vcmp.lt.s32.totalorder %v469_v26, 2  ;;  %vm490_vm9 = vcmp.lt.s32.totalorder %v469_v26, 3 }
  0x3c   : > { %v475_v47 = vor.u32 %v474_v40, %v473_v30  ;;  %v478_v48 = vor.u32 %v477_v41, %v476_v32  ;;  %v481_v49 = vor.u32 %v480_v42, %v479_v34  ;;  %v1009_v42 = vmov 1.0  }
  0x3d   : > { %v484_v50 = vor.u32 %v483_v43, %v482_v36  ;;  %v487_v51 = vor.u32 %v486_v45, %v485_v38 }
  0x3e   : > { %v492_v52 = vsel %vm488_vm6, %v472_v39, %v475_v47  ;;  %v493_v53 = vsel %vm491_vm7, %v481_v49, 2102212464  ;;  %v496_v54 = vsel %vm488_vm6, %v475_v47, %v478_v48  ;;  %v500_v55 = vsel %vm488_vm6, %v478_v48, %v481_v49  ;;  %v893_v39 = vld [vmem:[%s304_s12] ss:$0 sm:$0xff] }
  0x3f   : > { %v494_v56 = vsel %vm490_vm9, %v478_v48, %v493_v53  ;;  %v497_v57 = vsel %vm491_vm7, %v484_v50, 920167782  ;;  %v501_v58 = vsel %vm491_vm7, %v487_v51, 1326507024  ;;  %vm608_vm14 = vcmp.eq.s32.totalorder %v1063_v2, %v893_v39 }
  0x40   : > { %v498_v59 = vsel %vm490_vm9, %v481_v49, %v497_v57  ;;  %v502_v60 = vsel %vm490_vm9, %v484_v50, %v501_v58  ;;  %v495_v61 = vsel %vm489_vm8, %v492_v52, %v494_v56  ;;  %920 = vmatprep.subr.msk.mxu1 %vm608_vm14, %v1009_v42  ;;  %v565_v56 = vsub.s32 0, %v1063_v2 }
  0x41   : > { %v499_v62 = vsel %vm489_vm8, %v496_v54, %v498_v59  ;;  %v503_v63 = vsel %vm489_vm8, %v500_v55, %v502_v60  ;;  %v511_v7 = vmul.u32 %v504_v46, %v495_v61  ;;  %921 = vmatpush3.xpose.msk.msra.mxu1 %vm608_vm14, %v1009_v42 }
  0x42   : > { %v1107_v0 = vmul.u32.u64.low %v504_v46, %v503_v63  ;;  %v1108_v3 = vmul.u32.u64.high %v504_v46, %v503_v63, %v1107_v0  ;;  %v1110_v5 = vmul.u32.u64.low %v504_v46, %v499_v62  ;;  %v1111_v6 = vmul.u32.u64.high %v504_v46, %v499_v62, %v1110_v5 }
  0x43   : > { %v566_v58 = vrot.slane %v1098_v16, %v565_v56  ;;  %v590_v16 = vsub.s32 1, %v1063_v2 }
  0x44   : > { %vm513_vm10 = vc.u32 %v1108_v3, %v1110_v5  ;;  %v514_v8 = vadd.s32 1, %v1111_v6  ;;  %v512_v23 = vadd.s32 %v1110_v5, %v1108_v3 }
  0x46   : > { %v515_v9 = vsel %vm513_vm10, %v514_v8, %v1111_v6 }
  0x47   : > { %v516_v10 = vadd.s32 %v515_v9, %v511_v7  ;;  %v585_v7 = vrot.slane %v1095_v15, 7  ;;  %v578_v9 = vmul.f32 %v1095_v15, %v1073_v4 }
  0x49   : > { %v517_v11 = vadd.s32 536870912, %v516_v10 }
  0x4b   : > { %v518_v12 = vshrl.u32 %v517_v11, 30  ;;  %v593_v11 = vrot.slane %v1095_v15, 6 }
  0x4d   : > { %v519_v13 = vshll.u32 %v518_v12, 30  ;;  %v542_v40 = vsub.s32 4, %v518_v12 }
  0x4f   : > { %v520_v14 = vsub.s32 %v516_v10, %v519_v13  ;;  %v543_v20 = vsel %vm458_vm12, %v542_v40, %v518_v12  ;;  %v587_v10 = vmul.f32 %v585_v7, %v1073_v4  ;;  %v582_v13 = vrot.slane %v578_v9, %v565_v56 }
  0x50   : > { %v545_v43 = vsel %vm1120_vm13, 0, %v543_v20 }
  0x51   : > { %v522_v18 = vsub.s32 0, %v520_v14  ;;  %v549_v44 = vand.u32 3, %v545_v43 }
  0x53   : > { %v890_v19 = vmin.u32 %v522_v18, %v520_v14  ;;  %vm554_vm0 = vcmp.eq.s32.totalorder %v549_v44, 2  ;;  %vm551_vm1 = vcmp.eq.s32.totalorder %v549_v44, 0  ;;  %vm550_vm2 = vcmp.lt.s32.totalorder %v549_v44, 2 }
  0x54   : > { %v595_v18 = vmul.f32 %v593_v11, %v1073_v4  ;;  %v612_v4 = vld [vmem:[#allocation2 + $0x8] sm:$0xff] }
  0x55   : > { %v524_v21 = vclz %v890_v19  ;;  %v598_v19 = vsub.s32 2, %v1063_v2  ;;  %v611_v2 = vld [vmem:[#allocation2] sm:$0xff] }
  0x57   : > { %v891_v22 = vadd.s32 4294967294, %v524_v21 }
  0x59   : > { %vm892_vm11 = vcmp.lt.s32.totalorder %v891_v22, 0 }
  0x5a   : > { %v527_v24 = vsel %vm892_vm11, 0, %v891_v22 }
  0x5b   : > { %v528_v25 = vsub.s32 32, %v527_v24  ;;  %v529_v26 = vshll.u32 %v520_v14, %v527_v24  ;;  %v532_v27 = vsub.s32 4294967266, %v527_v24  ;;  %v591_v14 = vrot.slane %v587_v10, %v590_v16 }
  0x5d   : > { %v530_v28 = vshrl.u32 %v512_v23, %v528_v25  ;;  %v533_v29 = vadd.s32 127, %v532_v27  ;;  %v599_v25 = vrot.slane %v595_v18, %v598_v19 }
  0x5f   : > { %v531_v30 = vor.u32 %v530_v28, %v529_v26  ;;  %v534_v31 = vshll.u32 %v533_v29, 23  ;;  %v614_v29 = vld [vmem:[#allocation2 + $0x18] sm:$0xff] }
  0x61   : > { %v535_v32 = vor.u32 4788187, %v534_v31  ;;  %v538_v33 = vcvt.s32.f32 %v531_v30 }
  0x63   : > { %v536_v34 = vand.u32 2147483647, %v535_v32  ;;  %v613_v32 = vld [vmem:[#allocation2 + $0x10] sm:$0xff] }
  0x65   : > { %v539_v35 = vmul.f32 %v538_v33, %v536_v34 }
  0x67   : > { %v540_v37 = vxor.u32 2147483648, %v539_v35 }
  0x69   : > { %v541_v38 = vsel %vm458_vm12, %v540_v37, %v539_v35 }
  0x6a   : > { %v544_v41 = vsel %vm1120_vm13, %v1101_v17, %v541_v38 }
  0x6b   : > { %967 = vcosq.f32 %v544_v41 }
  0x6c   : > { %969 = vsinq.f32 %v544_v41 }
  0x78   : > { %v968_v45 = vpop.eup %967 }
  0x79   : > { %v970_v46 = vpop.eup %969  ;;  %v555_v47 = vxor.u32 2147483648, %v968_v45 }
  0x7a   : > { %v552_v48 = vxor.u32 2147483648, %v970_v46 }
  0x7b   : > { %v556_v49 = vsel %vm554_vm0, %v555_v47, %v970_v46 }
  0x7c   : > { %v553_v50 = vsel %vm551_vm1, %v968_v45, %v552_v48  ;;  %v896_v48 = vld [vmem:[%s1185_s1] ss:$0 sm:$0xff] }
  0x7d   : > { %v557_v51 = vsel %vm550_vm2, %v553_v50, %v556_v49 }
  0x7e   : > { %v558_v52 = vsel %vm548_vm3, nan, %v557_v51 }
  0x7f   : > { %v559_v53 = vadd.f32 1.0, %v558_v52 }
  0x81   : > { %v560_v54 = vmul.f32 0.5, %v559_v53 }
  0x83   : > { %v561_v55 = vsel %vm454_vm4, %v560_v54, 0.0 }
  0xd3   : > { %v428_v57 = vpop.f32.mrf.mxu0 }
  0xd4   : > { %v567_v61 = vsub.f32 %v566_v58, %v428_v57 }
  0xd5   : > { %v913_v59 = vpop.f32.mrf.mxu0 }
  0xd7   : > { %v433_v60 = vpop.f32.mrf.mxu0 }
  0xd8   : > { %v568_v62 = vsub.f32 0.0, %v433_v60  ;;  %v746_v60 = vld [vmem:[#allocation3] sm:$0xff] }
  0xd9   : > { %v916_v63 = vpop.f32.mrf.mxu0 }
  0xda   : > { %v569_v17 = vmul.f32 %v568_v62, %v567_v61  ;;  %v747_v63 = vld [vmem:[#allocation3 + $0x8] sm:$0xff] }
  0xdb   : > { %v438_v0 = vpop.f32.mrf.mxu0 }
  0xdc   : > { %v570_v3 = vmul.f32 %v569_v17, %v567_v61  ;;  %v562_v8 = vmul.f32 %v561_v55, %v438_v0 }
  0xdd   : > { %v919_v5 = vpop.f32.mrf.mxu0 }
  0xde   : > { %v571_v6 = vmul.f32 1.442695, %v570_v3  ;;  %v576_v12 = vrot.slane %v562_v8, %v565_v56 }
  0xe0   : > { %971 = vpow2.f32 %v571_v6 }
  0xed   : > { %v972_v21 = vpop.eup %971 }
  0xee   : > { %v577_v22 = vmul.f32 %v972_v21, %v576_v12 }
  0xf0   : > { %922 = vmatprep.mubr.f32.mxu1 %v577_v22  ;;  %v583_v23 = vmul.f32 %v582_v13, %v577_v22  ;;  %v592_v24 = vmul.f32 %v591_v14, %v577_v22  ;;  %v600_v26 = vmul.f32 %v599_v25, %v577_v22 }
  0xf2   : > { %923 = vmatmul.mubr.f32.vlgmr.msra.gmra.mxu1 %v583_v23 }
  0xf3   : > { %925 = vmatprep.mubr.f32.mxu1 %v592_v24 }
  0xf6   : > { %926 = vmatmul.mubr.f32.gmra.mxu1 %v600_v26 }
 0x1b2   : > { %v924_v15 = vpop.f32.mrf.mxu1 }
 0x1b3   : > { %v701_v27 = vadd.f32 %v924_v15, %v612_v4 }
 0x1b4   : > { %v681_v28 = vpop.f32.mrf.mxu1 }
 0x1b5   : > { %706 = vst.msk [vmem:[#allocation2 + $0x8] sm:$0xff] %vm320_vm15, %v701_v27  ;;  %v700_v30 = vadd.f32 %v681_v28, %v611_v2 }
 0x1b6   : > { %v927_v31 = vpop.f32.mrf.mxu1 }
 0x1b7   : > { %705 = vst.msk [vmem:[#allocation2] sm:$0xff] %vm320_vm15, %v700_v30  ;;  %v703_v33 = vadd.f32 %v927_v31, %v614_v29 }
 0x1b8   : > { %v691_v34 = vpop.f32.mrf.mxu1 }
 0x1b9   : > { %708 = vst.msk [vmem:[#allocation2 + $0x18] sm:$0xff] %vm320_vm15, %v703_v33  ;;  %v702_v35 = vadd.f32 %v691_v34, %v613_v32 }
 0x1bb   : > { %707 = vst.msk [vmem:[#allocation2 + $0x10] sm:$0xff] %vm320_vm15, %v702_v35 }
 0x1bc   : > { %v713_v37 = vld [vmem:[#allocation2 + $0x8] sm:$0xff] }
 0x1bd   : > { %v716_v40 = vmul.f32 %v713_v37, %v713_v37 }
 0x1be   : > { %v712_v1 = vld [vmem:[#allocation2] sm:$0xff] }
 0x1bf   : > { %v721_v36 = vadd.f32 1e-10, %v712_v1 }
 0x1c0   : > { %v715_v39 = vld [vmem:[#allocation2 + $0x18] sm:$0xff] }
 0x1c1   : > { %973 = vrsqrt.f32 %v721_v36  ;;  %v719_v20 = vmul.f32 %v715_v39, %v715_v39  ;;  %vm725_vm6 = vcmp.eq.f32.partialorder %v721_v36, inf  ;;  %v728_v47 = vand.u32 2147483648, %v721_v36 }
 0x1c2   : > { %v714_v38 = vld [vmem:[#allocation2 + $0x10] sm:$0xff]  ;;  %vm727_vm7 = vcmp.eq.f32.partialorder %v721_v36, 0.0 }
 0x1c3   : > { %v717_v41 = vmul.f32 %v714_v38, %v714_v38 }
 0x1c5   : > { %v718_v42 = vadd.f32 %v717_v41, %v716_v40 }
 0x1c7   : > { %v720_v43 = vadd.f32 %v719_v20, %v718_v42 }
 0x1c9   : > { %v722_v44 = vadd.f32 1e-10, %v720_v43 }
 0x1cb   : > { %975 = vrsqrt.f32 %v722_v44  ;;  %vm732_vm8 = vcmp.eq.f32.partialorder %v722_v44, inf  ;;  %v735_v55 = vand.u32 2147483648, %v722_v44  ;;  %vm734_vm9 = vcmp.eq.f32.partialorder %v722_v44, 0.0 }
 0x1ce   : > { %v974_v45 = vpop.eup %973 }
 0x1cf   : > { %v724_v46 = vmul.f32 %v974_v45, %v721_v36 }
 0x1d1   : > { %v726_v49 = vsel %vm725_vm6, %v721_v36, %v724_v46 }
 0x1d2   : > { %v729_v50 = vsel %vm727_vm7, %v728_v47, %v726_v49 }
 0x1d3   : > { %v744_v51 = vmul.f32 %v896_v48, %v729_v50 }
 0x1d5   : > { %v748_v52 = vsel %vm320_vm15, %v744_v51, 0.0 }
 0x1d6   : > { %749 = vadd.xlane.f32.xlu0 %v748_v52 }
 0x1d8   : > { %v976_v53 = vpop.eup %975 }
 0x1d9   : > { %v731_v54 = vmul.f32 %v976_v53, %v722_v44 }
 0x1db   : > { %v733_v56 = vsel %vm732_vm8, %v722_v44, %v731_v54 }
 0x1dc   : > { %v736_v57 = vsel %vm734_vm9, %v735_v55, %v733_v56 }
 0x1dd   : > { %v745_v58 = vmul.f32 %v896_v48, %v736_v57 }
 0x1df   : > { %v751_v59 = vsel %vm320_vm15, %v745_v58, 0.0 }
 0x1e0   : > { %752 = vadd.xlane.f32.xlu0 %v751_v59 }
 0x25f   : > { %v750_v61 = vpop.xlane.xlu0 %749 }
 0x260   : > { %v754_v62 = vadd.f32 %v750_v61, %v746_v60 }
 0x262   : > { %757 = vst.msk [vmem:[#allocation3] sm:$0xff] %vm330_vm5, %v754_v62 }
 0x269   : > { %v761_v17 = vld [vmem:[#allocation3] sm:$0xff]  ;;  %v753_v0 = vpop.xlane.xlu0 %752 }
 0x26a   : > { %v763_v3 = vmul.f32 %v761_v17, %v761_v17  ;;  %v755_v5 = vadd.f32 %v753_v0, %v747_v63 }
 0x26c   : > { %766 = vst.msk [vmem:[%s315_s22] sm:$0xff] %vm330_vm5, %v763_v3  ;;  %758 = vst.msk [vmem:[#allocation3 + $0x8] sm:$0xff] %vm330_vm5, %v755_v5 }
 0x273   : > { %v762_v6 = vld [vmem:[#allocation3 + $0x8] sm:$0xff] }
 0x274   : > { %v764_v7 = vmul.f32 %v762_v6, %v762_v6 }
 0x276   : > { %767 = vst.msk [vmem:[%s315_s22 + $0x8] sm:$0xff] %vm330_vm5, %v764_v7 }
 0x277 PF: > { %s15_s20 = sadd.s32 1, %s999_s20   ;;  %s1192_s18 = smov %s995_s19 }
 0x278   : > { %p12_p5 = scmp.ge.s32.totalorder %s15_s20, 4   ;;  %s1193_s19 = smov %s1195_s21 }
 0x27a   :  { %14 = sbr.rel (!%p12_p5) target bundleno = 2 (0x2), region = 95 }

</bundles_post_ra>
